<compile_context>
chip_gen: v5e
topology: v5e:2x2
jax: 0.10.0
libtpu: 0.0.40
codegen_flags: <defaults>
</compile_context>

<pallas_src>
import jax
import jax.numpy as jnp
from jax.experimental import pallas as pl
from jax.experimental.pallas import tpu as pltpu


def dense_head_kernel(x_ref, w_ref, b_ref, o_ref):
    # x_ref: (TB, HW, C) bf16 -- channels-last feature-map tile (HW = 7*7 = 49)
    # w_ref: (C, Np)     bf16 -- Linear weight^T, pre-scaled by 1/HW, lane-padded
    # b_ref: (1, Np)     f32  -- Linear bias, lane-padded
    # o_ref: (TB, Np)    f32
    x = x_ref[...].astype(jnp.float32)
    # AvgPool2d(7,7,stride=7) on a 7x7 map == mean over all HW positions.
    # The 1/HW scale is folded into w_ref, so a plain sum suffices here.
    pooled = jnp.sum(x, axis=1)                                     # (TB, C)
    y = jnp.dot(pooled.astype(jnp.bfloat16), w_ref[...],
                preferred_element_type=jnp.float32) + b_ref[...]    # (TB, Np)
    o_ref[...] = y


def dense_net_head(x_nchw, weight, bias, *, max_tb=32):
    """x_nchw: (B, 1024, 7, 7) output of base_net.features;
    weight: (class_num, 1024) (PyTorch layout); bias: (class_num,).
    Returns (B, class_num) float32."""
    B, C, H, W = x_nchw.shape
    HW = H * W
    class_num = weight.shape[0]

    # Channels-last, lane-dense layout for the kernel: (B, HW, C), bf16.
    x3 = jnp.transpose(x_nchw, (0, 2, 3, 1)).reshape(B, HW, C).astype(jnp.bfloat16)

    # Pad class dim to a lane multiple (128) for unmasked stores / full MXU N.
    n_pad = pl.cdiv(max(class_num, 1), 128) * 128
    # Fold the average (1/HW) into the weight once; transpose to (C, Np); bf16.
    w_t = (weight.T.astype(jnp.float32) * (1.0 / HW)).astype(jnp.bfloat16)
    w_t = jnp.pad(w_t, ((0, 0), (0, n_pad - class_num)))
    b2 = jnp.pad(bias.astype(jnp.float32), (0, n_pad - class_num)).reshape(1, n_pad)

    # Batch tile: big enough to amortize per-step overhead, small enough that
    # 2x double-buffered bf16 input + f32 intermediates stay well under the
    # scoped VMEM limit on v5e/v6e/v7x.
    tb = min(B, max_tb)
    b_pad = pl.cdiv(B, tb) * tb
    if b_pad != B:
        x3 = jnp.pad(x3, ((0, b_pad - B), (0, 0), (0, 0)))

    out = pl.pallas_call(
        dense_head_kernel,
        out_shape=jax.ShapeDtypeStruct((b_pad, n_pad), jnp.float32),
        grid_spec=pltpu.PrefetchScalarGridSpec(
            num_scalar_prefetch=0,
            grid=(b_pad // tb,),
            in_specs=[
                pl.BlockSpec((tb, HW, C), lambda i: (i, 0, 0)),
                pl.BlockSpec((C, n_pad), lambda i: (0, 0)),   # resident weight
                pl.BlockSpec((1, n_pad), lambda i: (0, 0)),   # resident bias
            ],
            out_specs=pl.BlockSpec((tb, n_pad), lambda i: (i, 0)),
        ),
        compiler_params=pltpu.CompilerParams(
            dimension_semantics=("parallel",),
            vmem_limit_bytes=32 << 20,
        ),
    )(x3, w_t, b2)

    # Drop batch padding and the lane-padded class columns.
    return out[:B, :class_num]


def _reference_head(x, weight, bias):
    B, C, H, W = x.shape
    pooled = jnp.mean(x.reshape(B, C, H * W), axis=-1)   # AvgPool(7,7) + Flatten
    return pooled @ weight.T + bias                       # Linear


if __name__ == "__main__":
    key = jax.random.PRNGKey(0)
    k_x, k_w, k_b, k_x2 = jax.random.split(key, 4)

    C = 1024          # fixed by nn.Linear(1024, class_num)
    H = W = 7         # DenseNet feature map size; AvgPool2d(7,7,stride=7) -> 1x1
    class_num = 10

    # Deterministic Linear(1024, class_num) parameters (PyTorch layout: (out, in))
    bound = 1.0 / jnp.sqrt(jnp.float32(C))
    weight = jax.random.uniform(k_w, (class_num, C), dtype=jnp.float32,
                                minval=-bound, maxval=bound)
    bias = jax.random.uniform(k_b, (class_num,), dtype=jnp.float32,
                              minval=-bound, maxval=bound)

    # Case 1: tiny batch (single grid step).
    B1 = 2
    x1 = jax.random.normal(k_x, (B1, C, H, W), dtype=jnp.float32)
    out1 = jax.block_until_ready(dense_net_head(x1, weight, bias))
    ref1 = _reference_head(x1, weight, bias)
    assert out1.shape == (B1, class_num)
    assert jnp.allclose(out1, ref1, atol=1e-2, rtol=1e-2)   # bf16 inputs

    # Case 2: exercises grid > 1 and batch padding (B=20, tile=8 -> pad to 24).
    B2 = 20
    x2 = jax.random.normal(k_x2, (B2, C, H, W), dtype=jnp.float32)
    out2 = jax.block_until_ready(dense_net_head(x2, weight, bias, max_tb=8))
    ref2 = _reference_head(x2, weight, bias)
    assert out2.shape == (B2, class_num)
    assert jnp.allclose(out2, ref2, atol=1e-2, rtol=1e-2)

    print("KERNEL_OK")
</pallas_src>

<mosaic_0001>
module attributes {stable_mosaic.version = 11 : i64} {
  func.func @dense_head_kernel(%arg0: i32, %arg1: memref<2x49x1024xbf16, #tpu.memory_space<vmem>>, %arg2: memref<1024x128xbf16, #tpu.memory_space<vmem>>, %arg3: memref<1x128xf32, #tpu.memory_space<vmem>>, %arg4: memref<2x128xf32, #tpu.memory_space<vmem>>) attributes {dimension_semantics = [#tpu.dimension_semantics<parallel>], iteration_bounds = array<i64: 1>, scalar_prefetch = 0 : i64, scratch_operands = 0 : i64, tpu.core_type = #tpu.core_type<tc>, window_params = [{transform_indices = @transform_0, window_bounds = array<i64: 2, 49, 1024>}, {pipeline_mode = #tpu.pipeline_mode<synchronous>, transform_indices = @transform_1, window_bounds = array<i64: 1024, 128>}, {pipeline_mode = #tpu.pipeline_mode<synchronous>, transform_indices = @transform_2, window_bounds = array<i64: 1, 128>}, {transform_indices = @transform_3, window_bounds = array<i64: 2, 128>}]} {
    %c0 = arith.constant 0 : index
    %c0_0 = arith.constant 0 : index
    %c0_1 = arith.constant 0 : index
    %0 = vector.load %arg1[%c0, %c0_0, %c0_1] : memref<2x49x1024xbf16, #tpu.memory_space<vmem>>, vector<2x49x1024xbf16>
    %1 = arith.extf %0 : vector<2x49x1024xbf16> to vector<2x49x1024xf32>
    %cst = arith.constant dense<0.000000e+00> : vector<2x1024xf32>
    %2 = vector.multi_reduction <add>, %1, %cst [1] : vector<2x49x1024xf32> to vector<2x1024xf32>
    %3 = arith.truncf %2 : vector<2x1024xf32> to vector<2x1024xbf16>
    %c0_2 = arith.constant 0 : index
    %c0_3 = arith.constant 0 : index
    %4 = vector.load %arg2[%c0_2, %c0_3] : memref<1024x128xbf16, #tpu.memory_space<vmem>>, vector<1024x128xbf16>
    %cst_4 = arith.constant dense<0.000000e+00> : vector<2x128xf32>
    %5 = tpu.matmul %3, %4, %cst_4 {dimension_numbers = #tpu.dot_dimension_numbers<[1], [0], [0], [1], [0, 0, 1, 1], [], []>} : vector<2x1024xbf16>, vector<1024x128xbf16>, vector<2x128xf32> -> vector<2x128xf32>
    %c0_5 = arith.constant 0 : index
    %c0_6 = arith.constant 0 : index
    %6 = vector.load %arg3[%c0_5, %c0_6] : memref<1x128xf32, #tpu.memory_space<vmem>>, vector<1x128xf32>
    %7 = vector.broadcast %6 : vector<1x128xf32> to vector<2x128xf32>
    %8 = arith.addf %5, %7 : vector<2x128xf32>
    %c0_7 = arith.constant 0 : index
    %c0_8 = arith.constant 0 : index
    %9 = vector.load %arg4[%c0_7, %c0_8] : memref<2x128xf32, #tpu.memory_space<vmem>>, vector<2x128xf32>
    tpu.vector_store %arg4[%c0_7, %c0_8], %8 {strides = array<i32>} : memref<2x128xf32, #tpu.memory_space<vmem>>, vector<2x128xf32>,
    return
  }
  func.func @transform_0(%arg0: i32) -> (i32, i32, i32) {
    %c0_i32 = arith.constant 0 : i32
    %c0_i32_0 = arith.constant 0 : i32
    %c0_i32_1 = arith.constant 0 : i32
    return %arg0, %c0_i32, %c0_i32_0 : i32, i32, i32
  }
  func.func @transform_1(%arg0: i32) -> (i32, i32) {
    %c0_i32 = arith.constant 0 : i32
    %c0_i32_0 = arith.constant 0 : i32
    %c0_i32_1 = arith.constant 0 : i32
    return %c0_i32, %c0_i32_0 : i32, i32
  }
  func.func @transform_2(%arg0: i32) -> (i32, i32) {
    %c0_i32 = arith.constant 0 : i32
    %c0_i32_0 = arith.constant 0 : i32
    %c0_i32_1 = arith.constant 0 : i32
    return %c0_i32, %c0_i32_0 : i32, i32
  }
  func.func @transform_3(%arg0: i32) -> (i32, i32) {
    %c0_i32 = arith.constant 0 : i32
    %c0_i32_0 = arith.constant 0 : i32
    return %arg0, %c0_i32 : i32, i32
  }
}

</mosaic_0001>

<bundles_post_ra>
// kernel: tpu_custom_call.1
= control target key start
LH: loop header
LB: loop body
LE: loop exit
PB: predicated region body
PF: predicated region fallthrough
CT: control target
= control target key end

     0   :  { %vm188_vm0 = vcmask 1040384   ;;  %s2084_s0 = inlined_call_operand.vmem [shape: bf16[2,49,1024], index: 0, kind: input, shape index: {}]   ;;  %s2085_s1 = inlined_call_operand.vmem [shape: bf16[1024,128], index: 1, kind: input, shape index: {}]   ;;  %s2086_s2 = inlined_call_operand.vmem [shape: f32[1,128], index: 2, kind: input, shape index: {}]   ;;  %s2087_s3 = inlined_call_operand.hbm [shape: f32[2,128], index: 3, kind: output, shape index: {}]  }
   0x1   :  { %v1365_v0 = vld [vmem:[%s2085_s1 + $0x38] sm:$0xff]  ;;  %v1364_v4 = vld [vmem:[%s2085_s1 + $0x30] sm:$0xff]  ;;  %v1363_v8 = vld [vmem:[%s2085_s1 + $0x28] sm:$0xff] }
   0x2   :  { %v1373_v1 = vld [vmem:[%s2085_s1 + $0x78] sm:$0xff]  ;;  %981 = vmatpush.bf16.msra.mxu0 %v1365_v0  ;;  %v1372_v5 = vld [vmem:[%s2085_s1 + $0x70] sm:$0xff]  ;;  %v1371_v9 = vld [vmem:[%s2085_s1 + $0x68] sm:$0xff] }
   0x3   :  { %v1381_v2 = vld [vmem:[%s2085_s1 + $0xb8] sm:$0xff]  ;;  %994 = vmatpush.bf16.msra.mxu1 %v1373_v1  ;;  %v1380_v6 = vld [vmem:[%s2085_s1 + $0xb0] sm:$0xff]  ;;  %v1379_v10 = vld [vmem:[%s2085_s1 + $0xa8] sm:$0xff] }
   0x4   :  { %v1389_v3 = vld [vmem:[%s2085_s1 + $0xf8] sm:$0xff]  ;;  %1007 = vmatpush.bf16.msra.mxu2 %v1381_v2  ;;  %v1388_v7 = vld [vmem:[%s2085_s1 + $0xf0] sm:$0xff]  ;;  %v1387_v11 = vld [vmem:[%s2085_s1 + $0xe8] sm:$0xff] }
   0x5   :  { %1020 = vmatpush.bf16.msra.mxu3 %v1389_v3  ;;  %v1362_v12 = vld [vmem:[%s2085_s1 + $0x20] sm:$0xff]  ;;  %v1361_v16 = vld [vmem:[%s2085_s1 + $0x18] sm:$0xff]  ;;  %v1534_v20 = vld [vmem:[%s2084_s0 + $0x8] sm:$0xff] }
   0x6   :  { %982 = vmatpush.bf16.msra.mxu0 %v1364_v4  ;;  %v1370_v13 = vld [vmem:[%s2085_s1 + $0x60] sm:$0xff]  ;;  %v1369_v17 = vld [vmem:[%s2085_s1 + $0x58] sm:$0xff]  ;;  %v1539_v21 = vld [vmem:[%s2084_s0 + $0x28] sm:$0xff]  ;;  %v73_v25 = vunpack.c.l.bf16 %v1534_v20  ;;  %v74_v31 = vunpack.c.h.bf16 %v1534_v20 }
   0x7   :  { %995 = vmatpush.bf16.msra.mxu1 %v1372_v5  ;;  %v1378_v14 = vld [vmem:[%s2085_s1 + $0xa0] sm:$0xff]  ;;  %v1377_v18 = vld [vmem:[%s2085_s1 + $0x98] sm:$0xff]  ;;  %v1544_v22 = vld [vmem:[%s2084_s0 + $0x48] sm:$0xff]  ;;  %v81_v26 = vunpack.c.l.bf16 %v1539_v21  ;;  %v82_v45 = vunpack.c.h.bf16 %v1539_v21 }
   0x8   :  { %1008 = vmatpush.bf16.msra.mxu2 %v1380_v6  ;;  %v1386_v15 = vld [vmem:[%s2085_s1 + $0xe0] sm:$0xff]  ;;  %v1385_v19 = vld [vmem:[%s2085_s1 + $0xd8] sm:$0xff]  ;;  %v1549_v23 = vld [vmem:[%s2084_s0 + $0x68] sm:$0xff]  ;;  %v89_v30 = vunpack.c.l.bf16 %v1544_v22  ;;  %v90_v51 = vunpack.c.h.bf16 %v1544_v22 }
   0x9   :  { %1021 = vmatpush.bf16.msra.mxu3 %v1388_v7  ;;  %v1554_v24 = vld [vmem:[%s2084_s0 + $0x88] sm:$0xff]  ;;  %v97_v35 = vunpack.c.l.bf16 %v1549_v23  ;;  %v210_v38 = vadd.f32 %v81_v26, %v73_v25  ;;  %v1360_v46 = vld [vmem:[%s2085_s1 + $0x10] sm:$0xff]  ;;  %v98_v57 = vunpack.c.h.bf16 %v1549_v23  ;;  %v1666_v22 = vld [vmem:[%s2084_s0 + $0x40] sm:$0xff] }
   0xa   :  { %983 = vmatpush.bf16.msra.mxu0 %v1363_v8  ;;  %v1561_v27 = vld [vmem:[%s2084_s0 + $0xa8] sm:$0xff]  ;;  %v105_v42 = vunpack.c.l.bf16 %v1554_v24  ;;  %v1368_v47 = vld [vmem:[%s2085_s1 + $0x50] sm:$0xff]  ;;  %v106_v6 = vunpack.c.h.bf16 %v1554_v24 }
   0xb   :  { %996 = vmatpush.bf16.msra.mxu1 %v1371_v9  ;;  %v1566_v28 = vld [vmem:[%s2084_s0 + $0xc8] sm:$0x11]  ;;  %v113_v48 = vunpack.c.l.bf16 %v1561_v27  ;;  %v211_v50 = vadd.f32 %v210_v38, %v89_v30  ;;  %v1376_v52 = vld [vmem:[%s2085_s1 + $0x90] sm:$0xff]  ;;  %v114_v7 = vunpack.c.h.bf16 %v1561_v27 }
   0xc   :  { %1009 = vmatpush.bf16.msra.mxu2 %v1379_v10  ;;  %v44_v29 = vld [vmem:[%s2084_s0 + $0xe8] sm:$0xff]  ;;  %v121_v36 = vunpack.c.l.bf16 %v1566_v28  ;;  %v1384_v53 = vld [vmem:[%s2085_s1 + $0xd0] sm:$0xff]  ;;  %v122_v63 = vunpack.c.h.bf16 %v1566_v28 }
   0xd   :  { %1022 = vmatpush.bf16.msra.mxu3 %v1387_v11  ;;  %v48_v32 = vld [vmem:[%s2084_s0 + $0x108] sm:$0xff]  ;;  %v129_v37 = vunpack.c.l.bf16 %v44_v29  ;;  %v212_v59 = vadd.f32 %v211_v50, %v97_v35  ;;  %v130_v61 = vunpack.c.h.bf16 %v44_v29 }
   0xe   :  { %984 = vmatpush.bf16.msra.mxu0 %v1362_v12  ;;  %v1579_v33 = vld [vmem:[%s2084_s0 + $0x128] sm:$0xff]  ;;  %v137_v43 = vunpack.c.l.bf16 %v48_v32  ;;  %v215_v60 = vsel %vm188_vm0, %v121_v36, 0.0  ;;  %v138_v0 = vunpack.c.h.bf16 %v48_v32  ;;  %v223_v12 = vadd.f32 %v82_v45, %v74_v31 }
   0xf   :  { %997 = vmatpush.bf16.msra.mxu1 %v1370_v13  ;;  %v1584_v34 = vld [vmem:[%s2084_s0 + $0x148] sm:$0xff]  ;;  %v145_v44 = vunpack.c.l.bf16 %v1579_v33  ;;  %v146_v1 = vunpack.c.h.bf16 %v1579_v33  ;;  %v213_v5 = vadd.f32 %v212_v59, %v105_v42 }
  0x10   :  { %1010 = vmatpush.bf16.msra.mxu2 %v1378_v14  ;;  %v1591_v39 = vld [vmem:[%s2084_s0 + $0x168] sm:$0xff]  ;;  %v153_v49 = vunpack.c.l.bf16 %v1584_v34  ;;  %v314_v56 = vadd.f32 %v137_v43, %v129_v37  ;;  %v154_v11 = vunpack.c.h.bf16 %v1584_v34  ;;  %v327_v13 = vadd.f32 %v138_v0, %v130_v61  ;;  %v1647_v14 = vld [vmem:[%s2084_s0] sm:$0xff] }
  0x11   :  { %1023 = vmatpush.bf16.msra.mxu3 %v1386_v15  ;;  %v1596_v40 = vld [vmem:[%s2084_s0 + $0x188] sm:$0xff]  ;;  %v161_v54 = vunpack.c.l.bf16 %v1591_v39  ;;  %v1652_v15 = vld [vmem:[%s2084_s0 + $0x20] sm:$0xff]  ;;  %v162_v20 = vunpack.c.h.bf16 %v1591_v39 }
  0x12   :  { %v1601_v41 = vld [vmem:[%s2084_s0 + $0x1a8] sm:$0x11]  ;;  %985 = vmatpush.bf16.msra.mxu0 %v1361_v16  ;;  %v169_v55 = vunpack.c.l.bf16 %v1596_v40  ;;  %v315_v62 = vadd.f32 %v314_v56, %v145_v44  ;;  %v1358_v16 = vld [vmem:[%s2085_s1] sm:$0xff]  ;;  %v170_v21 = vunpack.c.h.bf16 %v1596_v40 }
  0x13   :  { %998 = vmatpush.bf16.msra.mxu1 %v1369_v17  ;;  %v177_v58 = vunpack.c.l.bf16 %v1601_v41  ;;  %v1359_v2 = vld [vmem:[%s2085_s1 + $0x8] sm:$0xff]  ;;  %v178_v8 = vunpack.c.h.bf16 %v1601_v41  ;;  %v1366_v17 = vld [vmem:[%s2085_s1 + $0x40] sm:$0xff] }
  0x14   :  { %1011 = vmatpush.bf16.msra.mxu2 %v1377_v18  ;;  %v1367_v3 = vld [vmem:[%s2085_s1 + $0x48] sm:$0xff]  ;;  %v316_v10 = vadd.f32 %v315_v62, %v153_v49  ;;  %v214_v18 = vadd.f32 %v213_v5, %v113_v48 }
  0x15   :  { %1024 = vmatpush.bf16.msra.mxu3 %v1385_v19  ;;  %v1375_v4 = vld [vmem:[%s2085_s1 + $0x88] sm:$0xff]  ;;  %v319_v19 = vsel %vm188_vm0, %v177_v58, 0.0 }
  0x16   :  { %986 = vmatpush.bf16.msra.mxu0 %v1360_v46  ;;  %v1383_v9 = vld [vmem:[%s2085_s1 + $0xc8] sm:$0xff] }
  0x17   :  { %999 = vmatpush.bf16.msra.mxu1 %v1368_v47 }
  0x18   :  { %1012 = vmatpush.bf16.msra.mxu2 %v1376_v52 }
  0x19   :  { %1025 = vmatpush.bf16.msra.mxu3 %v1384_v53 }
  0x1a   :  { %8 = vsyncpa [#allocation3], 0  ;;  %v317_v23 = vadd.f32 %v316_v10, %v161_v54  ;;  %v224_v24 = vadd.f32 %v223_v12, %v90_v51  ;;  %v1669_v25 = vsel %vm188_vm0, %v122_v63, 0.0  ;;  %v328_v26 = vadd.f32 %v327_v13, %v146_v1  ;;  %v1674_v28 = vld [vmem:[%s2084_s0 + $0x60] sm:$0xff]  ;;  %987 = vmatpush.bf16.msra.mxu0 %v1359_v2  ;;  %v1397_v45 = vld [vmem:[%s2085_s1 + $0x138] sm:$0xff]  ;;  %s1450_s8 = smov [#allocation2]  }
  0x1b   :  { %v1679_v29 = vld [vmem:[%s2084_s0 + $0xe0] sm:$0xff]  ;;  %1000 = vmatpush.bf16.msra.mxu1 %v1367_v3  ;;  %v216_v33 = vadd.f32 %v215_v60, %v214_v18  ;;  %v332_v34 = vsel %vm188_vm0, %v178_v8, 0.0  ;;  %v71_v36 = vunpack.c.l.bf16 %v1647_v14  ;;  %v79_v37 = vunpack.c.l.bf16 %v1652_v15  ;;  %v1405_v46 = vld [vmem:[%s2085_s1 + $0x178] sm:$0xff]  ;;  %v1396_v5 = vld [vmem:[%s2085_s1 + $0x130] sm:$0xff]  ;;  %s1091_s9 = sshll.u32 %s1450_s8, 4  ;;  %s1093_s12 = sshll.u32 %s2087_s3, 4  ;;  %s1092_s9 = int_to_ptr.vmem [resolvable:$true] %s1091_s9  ;;  %s1094_s12 = int_to_ptr.hbm [resolvable:$true] %s1093_s12 }
  0x1c   :  { %v1684_v30 = vld [vmem:[%s2084_s0 + $0x100] sm:$0xff]  ;;  %1013 = vmatpush.bf16.msra.mxu2 %v1375_v4  ;;  %v318_v38 = vadd.f32 %v317_v23, %v169_v55  ;;  %v225_v39 = vadd.f32 %v224_v24, %v98_v57  ;;  %v329_v40 = vadd.f32 %v328_v26, %v154_v11  ;;  %v87_v44 = vunpack.c.l.bf16 %v1666_v22  ;;  %v1413_v47 = vld [vmem:[%s2085_s1 + $0x1b8] sm:$0xff]  ;;  %v1412_v10 = vld [vmem:[%s2085_s1 + $0x1b0] sm:$0xff] }
  0x1d   :  { %v1374_v31 = vld [vmem:[%s2085_s1 + $0x80] sm:$0xff]  ;;  %1026 = vmatpush.bf16.msra.mxu3 %v1383_v9  ;;  %v217_v48 = vrot.slane %v216_v33, 4  ;;  %v95_v49 = vunpack.c.l.bf16 %v1674_v28  ;;  %v127_v50 = vunpack.c.l.bf16 %v1679_v29  ;;  %v135_v51 = vunpack.c.l.bf16 %v1684_v30  ;;  %v1421_v52 = vld [vmem:[%s2085_s1 + $0x1f8] sm:$0xff]  ;;  %v1420_v11 = vld [vmem:[%s2085_s1 + $0x1f0] sm:$0xff] }
  0x1e   :  { %v1382_v32 = vld [vmem:[%s2085_s1 + $0xc0] sm:$0xff]  ;;  %v320_v53 = vadd.f32 %v319_v19, %v318_v38  ;;  %v226_v54 = vadd.f32 %v225_v39, %v106_v6  ;;  %v330_v55 = vadd.f32 %v329_v40, %v162_v20  ;;  %988 = vmatpush.bf16.msra.mxu0 %v1358_v16  ;;  %v183_v4 = vadd.f32 %v79_v37, %v71_v36  ;;  %v1404_v6 = vld [vmem:[%s2085_s1 + $0x170] sm:$0xff] }
  0x1f   :  { %v1696_v35 = vld [vmem:[%s2084_s0 + $0x80] sm:$0xff]  ;;  %1001 = vmatpush.bf16.msra.mxu1 %v1366_v17  ;;  %v218_v59 = vadd.f32 %v217_v48, %v216_v33  ;;  %v288_v9 = vadd.f32 %v135_v51, %v127_v50  ;;  %vm572_vm1 = vcmask 1041409   ;;  %v1403_v33 = vld [vmem:[%s2085_s1 + $0x168] sm:$0xff]  ;;  %v80_v50 = vunpack.c.h.bf16 %v1652_v15 }
  0x20   :  { %v1703_v41 = vld [vmem:[%s2084_s0 + $0xa0] sm:$0xff]  ;;  %v103_v58 = vunpack.c.l.bf16 %v1696_v35  ;;  %1014 = vmatpush.bf16.msra.mxu2 %v1374_v31  ;;  %v321_v0 = vrot.slane %v320_v53, 4  ;;  %v227_v1 = vadd.f32 %v226_v54, %v114_v7  ;;  %v331_v2 = vadd.f32 %v330_v55, %v170_v21 }
  0x21   :  { %v1708_v42 = vld [vmem:[%s2084_s0 + $0xc0] sm:$0x11]  ;;  %v111_v61 = vunpack.c.l.bf16 %v1703_v41  ;;  %1027 = vmatpush.bf16.msra.mxu3 %v1382_v32  ;;  %v219_v8 = vrot.slane %v218_v59, 2  ;;  %v184_v20 = vadd.f32 %v183_v4, %v87_v44  ;;  %v1411_v44 = vld [vmem:[%s2085_s1 + $0x1a8] sm:$0xff]  ;;  %v88_v54 = vunpack.c.h.bf16 %v1666_v22 }
  0x22   :  { %v1713_v43 = vld [vmem:[%s2084_s0 + $0x120] sm:$0xff]  ;;  %v119_v62 = vunpack.c.l.bf16 %v1708_v42  ;;  %1033 = vmatpush.bf16.msrb.mxu0 %v1397_v45  ;;  %v322_v12 = vadd.f32 %v321_v0, %v320_v53  ;;  %v229_v13 = vadd.f32 %v1669_v25, %v227_v1  ;;  %v333_v16 = vadd.f32 %v332_v34, %v331_v2  ;;  %v1395_v25 = vld [vmem:[%s2085_s1 + $0x128] sm:$0xff] }
  0x23   :  { %v1734_v56 = vld [vmem:[%s2084_s0 + $0x140] sm:$0xff]  ;;  %v143_v63 = vunpack.c.l.bf16 %v1713_v43  ;;  %1046 = vmatpush.bf16.msrb.mxu1 %v1405_v46  ;;  %v220_v18 = vadd.f32 %v219_v8, %v218_v59  ;;  %v185_v34 = vadd.f32 %v184_v20, %v95_v49  ;;  %v1419_v45 = vld [vmem:[%s2085_s1 + $0x1e8] sm:$0xff]  ;;  %v72_v46 = vunpack.c.h.bf16 %v1647_v14 }
  0x24   :  { %v1739_v57 = vld [vmem:[%s2084_s0 + $0x1a0] sm:$0x11]  ;;  %v151_v27 = vunpack.c.l.bf16 %v1734_v56  ;;  %1059 = vmatpush.bf16.msrb.mxu2 %v1413_v47  ;;  %v323_v23 = vrot.slane %v322_v12, 2  ;;  %v230_v24 = vrot.slane %v229_v13, 4  ;;  %v334_v26 = vrot.slane %v333_v16, 4 }
  0x25   :  { %v1745_v60 = vld [vmem:[%s2084_s0 + $0x160] sm:$0xff]  ;;  %v175_v7 = vunpack.c.l.bf16 %v1739_v57  ;;  %1072 = vmatpush.bf16.msrb.mxu3 %v1421_v52  ;;  %v289_v21 = vadd.f32 %v288_v9, %v143_v63  ;;  %v189_v31 = vsel %vm188_vm0, %v119_v62, 0.0  ;;  %v221_v32 = vrot.slane %v220_v18, 1 }
  0x26   :  { %v1755_v3 = vld [vmem:[%s2084_s0 + $0x180] sm:$0xff]  ;;  %v159_v17 = vunpack.c.l.bf16 %v1745_v60  ;;  %1034 = vmatpush.bf16.msrb.mxu0 %v1396_v5  ;;  %v324_v38 = vadd.f32 %v323_v23, %v322_v12  ;;  %v231_v39 = vadd.f32 %v230_v24, %v229_v13  ;;  %v335_v40 = vadd.f32 %v334_v26, %v333_v16  ;;  %v1393_v23 = vld [vmem:[%s2085_s1 + $0x118] sm:$0xff] }
  0x27   :  { %v167_v19 = vunpack.c.l.bf16 %v1755_v3  ;;  %1047 = vmatpush.bf16.msrb.mxu1 %v1404_v6  ;;  %v290_v36 = vadd.f32 %v289_v21, %v151_v27  ;;  %v293_v37 = vsel %vm188_vm0, %v175_v7, 0.0  ;;  %v222_v47 = vadd.f32 %v221_v32, %v220_v18  ;;  %v1394_v63 = vld [vmem:[%s2085_s1 + $0x120] sm:$0xff] }
  0x28   :  { %1060 = vmatpush.bf16.msrb.mxu2 %v1412_v10  ;;  %v186_v48 = vadd.f32 %v185_v34, %v103_v58  ;;  %v325_v51 = vrot.slane %v324_v38, 1  ;;  %v232_v52 = vrot.slane %v231_v39, 2  ;;  %v336_v53 = vrot.slane %v335_v40, 2  ;;  %v1402_v14 = vld [vmem:[%s2085_s1 + $0x160] sm:$0xff] }
  0x29   :  { %1073 = vmatpush.bf16.msrb.mxu3 %v1420_v11  ;;  %v291_v49 = vadd.f32 %v290_v36, %v159_v17  ;;  %v394_v55 = vpack.c.bf16 %v222_v47, %v222_v47  ;;  %v96_v15 = vunpack.c.h.bf16 %v1674_v28  ;;  %v1410_v22 = vld [vmem:[%s2085_s1 + $0x1a0] sm:$0xff]  ;;  %v104_v2 = vunpack.c.h.bf16 %v1696_v35  ;;  %v1392_v36 = vld [vmem:[%s2085_s1 + $0x110] sm:$0xff] }
  0x2a   :  { %1035 = vmatpush.bf16.msrb.mxu0 %v1395_v25  ;;  %v187_v59 = vadd.f32 %v186_v48, %v111_v61  ;;  %v326_v58 = vadd.f32 %v325_v51, %v324_v38  ;;  %v233_v0 = vadd.f32 %v232_v52, %v231_v39  ;;  %v337_v1 = vadd.f32 %v336_v53, %v335_v40  ;;  %v1418_v61 = vld [vmem:[%s2085_s1 + $0x1e0] sm:$0xff] }
  0x2b   :  { %1048 = vmatpush.bf16.msrb.mxu1 %v1403_v33  ;;  %v292_v62 = vadd.f32 %v291_v49, %v167_v19  ;;  %v128_v6 = vunpack.c.h.bf16 %v1679_v29  ;;  %v136_v28 = vunpack.c.h.bf16 %v1684_v30  ;;  %v558_v27 = vunpack.c.l.b16 %v394_v55 }
  0x2c   :  { %1061 = vmatpush.bf16.msrb.mxu2 %v1411_v44  ;;  %v190_v4 = vadd.f32 %v189_v31, %v187_v59  ;;  %v402_v8 = vpack.c.bf16 %v326_v58, %v326_v58  ;;  %v234_v7 = vrot.slane %v233_v0, 1  ;;  %v338_v9 = vrot.slane %v337_v1, 1 }
  0x2d   :  { %1074 = vmatpush.bf16.msrb.mxu3 %v1419_v45  ;;  %v294_v5 = vadd.f32 %v293_v37, %v292_v62  ;;  %v120_v12 = vunpack.c.h.bf16 %v1708_v42  ;;  %v144_v13 = vunpack.c.h.bf16 %v1713_v43  ;;  %v152_v29 = vunpack.c.h.bf16 %v1734_v56  ;;  %v1401_v42 = vld [vmem:[%s2085_s1 + $0x158] sm:$0xff]  ;;  %v1400_v37 = vld [vmem:[%s2085_s1 + $0x150] sm:$0xff] }
  0x2e   :  { %v191_v10 = vrot.slane %v190_v4, 4  ;;  %1036 = vmatpush.bf16.msrb.mxu0 %v1394_v63  ;;  %v566_v16 = vunpack.c.l.b16 %v402_v8  ;;  %v235_v17 = vadd.f32 %v234_v7, %v233_v0  ;;  %v339_v18 = vadd.f32 %v338_v9, %v337_v1  ;;  %v1409_v43 = vld [vmem:[%s2085_s1 + $0x198] sm:$0xff]  ;;  %v1408_v45 = vld [vmem:[%s2085_s1 + $0x190] sm:$0xff]  ;;  %v1407_v1 = vld [vmem:[%s2085_s1 + $0x188] sm:$0xff] }
  0x2f   :  { %v295_v11 = vrot.slane %v294_v5, 4  ;;  %1049 = vmatpush.bf16.msrb.mxu1 %v1402_v14  ;;  %v160_v20 = vunpack.c.h.bf16 %v1745_v60  ;;  %v197_v21 = vadd.f32 %v80_v50, %v72_v46  ;;  %v301_v31 = vadd.f32 %v136_v28, %v128_v6  ;;  %v1417_v60 = vld [vmem:[%s2085_s1 + $0x1d8] sm:$0xff]  ;;  %v1416_v46 = vld [vmem:[%s2085_s1 + $0x1d0] sm:$0xff]  ;;  %v1399_v14 = vld [vmem:[%s2085_s1 + $0x148] sm:$0xff] }
  0x30   :  { %1062 = vmatpush.bf16.msrb.mxu2 %v1410_v22  ;;  %v192_v30 = vadd.f32 %v191_v10, %v190_v4  ;;  %v575_v24 = vsel %vm572_vm1, %v566_v16, %v558_v27  ;;  %v395_v56 = vpack.c.bf16 %v235_v17, %v235_v17  ;;  %v403_v26 = vpack.c.bf16 %v339_v18, %v339_v18  ;;  %v1415_v22 = vld [vmem:[%s2085_s1 + $0x1c8] sm:$0xff]  ;;  %v1885_v28 = vld [vmem:[%s2084_s0 + $0x70] sm:$0xff]  ;;  %v1390_v18 = vld [vmem:[%s2085_s1 + $0x100] sm:$0xff] }
  0x31   :  { %1075 = vmatpush.bf16.msrb.mxu3 %v1418_v61  ;;  %v296_v19 = vadd.f32 %v295_v11, %v294_v5  ;;  %v583_v32 = vpack.c.b16 %v575_v24, %v575_v24  ;;  %v198_v34 = vadd.f32 %v197_v21, %v88_v54  ;;  %v176_v40 = vunpack.c.h.bf16 %v1739_v57  ;;  %v1841_v57 = vld [vmem:[%s2084_s0 + $0x10] sm:$0xff]  ;;  %v1406_v21 = vld [vmem:[%s2085_s1 + $0x180] sm:$0xff] }
  0x32   :  { %v193_v25 = vrot.slane %v192_v30, 2  ;;  %1037 = vmatpush.bf16.msrb.mxu0 %v1393_v23  ;;  %v559_v38 = vunpack.c.l.b16 %v395_v56  ;;  %v567_v39 = vunpack.c.l.b16 %v403_v26  ;;  %v302_v44 = vadd.f32 %v301_v31, %v144_v13  ;;  %v1848_v54 = vld [vmem:[%s2084_s0 + $0x30] sm:$0xff]  ;;  %v1414_v23 = vld [vmem:[%s2085_s1 + $0x1c0] sm:$0xff] }
  0x33   :  { %v297_v33 = vrot.slane %v296_v19, 2  ;;  %1050 = vmatpush.bf16.msrb.mxu1 %v1401_v42  ;;  %1015 = vmatmul.bf16.vlgmr.msra.gmra.mxu2 %v583_v32  ;;  %v112_v49 = vunpack.c.h.bf16 %v1703_v41  ;;  %v199_v50 = vadd.f32 %v198_v34, %v96_v15  ;;  %v168_v52 = vunpack.c.h.bf16 %v1755_v3  ;;  %v1853_v41 = vld [vmem:[%s2084_s0 + $0xf0] sm:$0xff]  ;;  %v1391_v3 = vld [vmem:[%s2085_s1 + $0x108] sm:$0xff] }
  0x34   :  { %1063 = vmatpush.bf16.msrb.mxu2 %v1409_v43  ;;  %v194_v47 = vadd.f32 %v193_v25, %v192_v30  ;;  %v576_v51 = vsel %vm572_vm1, %v567_v39, %v559_v38  ;;  %v303_v53 = vadd.f32 %v302_v44, %v152_v29  ;;  %v1866_v15 = vld [vmem:[%s2084_s0 + $0x110] sm:$0xff]  ;;  %v202_v58 = vsel %vm188_vm0, %v120_v12, 0.0  ;;  %v1398_v29 = vld [vmem:[%s2085_s1 + $0x140] sm:$0xff] }
  0x35   :  { %1076 = vmatpush.bf16.msrb.mxu3 %v1417_v60  ;;  %v298_v48 = vadd.f32 %v297_v33, %v296_v19  ;;  %v584_v55 = vpack.c.b16 %v576_v51, %v576_v51  ;;  %v200_v63 = vadd.f32 %v199_v50, %v104_v2  ;;  %v306_v35 = vsel %vm188_vm0, %v176_v40, 0.0  ;;  %v1879_v61 = vld [vmem:[%s2084_s0 + $0x50] sm:$0xff] }
  0x36   :  { %v195_v59 = vrot.slane %v194_v47, 1  ;;  %1038 = vmatpush.bf16.msrb.mxu0 %v1392_v36  ;;  %v304_v0 = vadd.f32 %v303_v53, %v160_v20  ;;  %v75_v2 = vunpack.c.l.bf16 %v1841_v57  ;;  %v1890_v8 = vld [vmem:[%s2084_s0 + $0xd0] sm:$0x11]  ;;  %v83_v7 = vunpack.c.l.bf16 %v1848_v54 }
  0x37   :  { %v299_v62 = vrot.slane %v298_v48, 1  ;;  %1051 = vmatpush.bf16.msrb.mxu1 %v1400_v37  ;;  %1028 = vmatmul.bf16.vlgmr.msra.gmra.mxu3 %v584_v55  ;;  %v201_v6 = vadd.f32 %v200_v63, %v112_v49  ;;  %v1895_v27 = vld [vmem:[%s2084_s0 + $0x130] sm:$0xff]  ;;  %v131_v11 = vunpack.c.l.bf16 %v1853_v41  ;;  %v139_v12 = vunpack.c.l.bf16 %v1866_v15 }
  0x38   :  { %1064 = vmatpush.bf16.msrb.mxu2 %v1408_v45  ;;  %v196_v4 = vadd.f32 %v195_v59, %v194_v47  ;;  %v305_v9 = vadd.f32 %v304_v0, %v168_v52  ;;  %v1901_v10 = vld [vmem:[%s2084_s0 + $0x150] sm:$0xff]  ;;  %v91_v19 = vunpack.c.l.bf16 %v1879_v61  ;;  %v99_v43 = vunpack.c.l.bf16 %v1885_v28 }
  0x39   :  { %1077 = vmatpush.bf16.msrb.mxu3 %v1416_v46  ;;  %v300_v5 = vadd.f32 %v299_v62, %v298_v48  ;;  %v203_v17 = vadd.f32 %v202_v58, %v201_v6  ;;  %v1914_v30 = vld [vmem:[%s2084_s0 + $0x1b0] sm:$0x11]  ;;  %v123_v24 = vunpack.c.l.bf16 %v1890_v8  ;;  %v147_v56 = vunpack.c.l.bf16 %v1895_v27 }
  0x3a   :  { %v392_v13 = vpack.c.bf16 %v196_v4, %v196_v4  ;;  %1039 = vmatpush.bf16.msrb.mxu0 %v1391_v3  ;;  %v307_v20 = vadd.f32 %v306_v35, %v305_v9  ;;  %v1926_v42 = vld [vmem:[%s2084_s0 + $0x90] sm:$0xff]  ;;  %v236_v25 = vadd.f32 %v83_v7, %v75_v2  ;;  %v155_v37 = vunpack.c.l.bf16 %v1901_v10 }
  0x3b   :  { %v400_v16 = vpack.c.bf16 %v300_v5, %v300_v5  ;;  %1052 = vmatpush.bf16.msrb.mxu1 %v1399_v14  ;;  %v204_v60 = vrot.slane %v203_v17, 4  ;;  %v1934_v32 = vld [vmem:[%s2084_s0 + $0x170] sm:$0xff]  ;;  %v179_v38 = vunpack.c.l.bf16 %v1914_v30  ;;  %v340_v39 = vadd.f32 %v139_v12, %v131_v11 }
  0x3c   :  { %1065 = vmatpush.bf16.msrb.mxu2 %v1407_v1  ;;  %v556_v26 = vunpack.c.l.b16 %v392_v13  ;;  %v308_v33 = vrot.slane %v307_v20, 4  ;;  %v1939_v34 = vld [vmem:[%s2084_s0 + $0xb0] sm:$0xff]  ;;  %v107_v45 = vunpack.c.l.bf16 %v1926_v42  ;;  %v237_v46 = vadd.f32 %v236_v25, %v91_v19 }
  0x3d   :  { %1078 = vmatpush.bf16.msrb.mxu3 %v1415_v22  ;;  %v564_v31 = vunpack.c.l.b16 %v400_v16  ;;  %v1944_v36 = vld [vmem:[%s2084_s0 + $0x190] sm:$0xff]  ;;  %v205_v44 = vadd.f32 %v204_v60, %v203_v17  ;;  %v163_v49 = vunpack.c.l.bf16 %v1934_v32  ;;  %v341_v50 = vadd.f32 %v340_v39, %v147_v56  ;;  %v1984_v39 = vld [vmem:[%s2084_s0 + $0xf8] sm:$0xff] }
  0x3e   :  { %1040 = vmatpush.bf16.msrb.mxu0 %v1390_v18  ;;  %v309_v48 = vadd.f32 %v308_v33, %v307_v20  ;;  %v115_v52 = vunpack.c.l.bf16 %v1939_v34  ;;  %v171_v53 = vunpack.c.l.bf16 %v1944_v36  ;;  %v238_v55 = vadd.f32 %v237_v46, %v99_v43  ;;  %v1995_v46 = vld [vmem:[%s2084_s0 + $0x58] sm:$0xff] }
  0x3f   :  { %v573_v40 = vsel %vm572_vm1, %v564_v31, %v556_v26  ;;  %1053 = vmatpush.bf16.msrb.mxu1 %v1398_v29  ;;  %v206_v51 = vrot.slane %v205_v44, 2  ;;  %v241_v62 = vsel %vm188_vm0, %v123_v24, 0.0  ;;  %v342_v63 = vadd.f32 %v341_v50, %v155_v37 }
  0x40   :  { %v581_v47 = vpack.c.b16 %v573_v40, %v573_v40  ;;  %1066 = vmatpush.bf16.msrb.mxu2 %v1406_v21  ;;  %v310_v59 = vrot.slane %v309_v48, 2  ;;  %v345_v3 = vsel %vm188_vm0, %v179_v38, 0.0  ;;  %v239_v58 = vadd.f32 %v238_v55, %v107_v45 }
  0x41   :  { %1079 = vmatpush.bf16.msrb.mxu3 %v1414_v23  ;;  %v207_v14 = vadd.f32 %v206_v51, %v205_v44  ;;  %v76_v0 = vunpack.c.h.bf16 %v1841_v57  ;;  %v84_v35 = vunpack.c.h.bf16 %v1848_v54  ;;  %v343_v22 = vadd.f32 %v342_v63, %v163_v49  ;;  %v2017_v63 = vld [vmem:[%s2084_s0 + $0xd8] sm:$0x11] }
  0x42   :  { %989 = vmatmul.bf16.vlgmr.msra.gmra.mxu0 %v581_v47  ;;  %v311_v1 = vadd.f32 %v310_v59, %v309_v48  ;;  %v132_v2 = vunpack.c.h.bf16 %v1853_v41  ;;  %v140_v4 = vunpack.c.h.bf16 %v1866_v15  ;;  %v240_v6 = vadd.f32 %v239_v58, %v115_v52  ;;  %v2000_v47 = vld [vmem:[%s2084_s0 + $0x78] sm:$0xff] }
  0x43   :  { %v208_v5 = vrot.slane %v207_v14, 1  ;;  %v92_v7 = vunpack.c.h.bf16 %v1879_v61  ;;  %v100_v9 = vunpack.c.h.bf16 %v1885_v28  ;;  %v344_v12 = vadd.f32 %v343_v22, %v171_v53  ;;  %v2006_v52 = vld [vmem:[%s2084_s0 + $0x98] sm:$0xff] }
  0x44   :  { %v312_v11 = vrot.slane %v311_v1, 1  ;;  %v108_v13 = vunpack.c.h.bf16 %v1926_v42  ;;  %v148_v57 = vunpack.c.h.bf16 %v1895_v27  ;;  %v242_v54 = vadd.f32 %v241_v62, %v240_v6  ;;  %v2011_v53 = vld [vmem:[%s2084_s0 + $0x138] sm:$0xff] }
  0x45   :  { %v209_v16 = vadd.f32 %v208_v5, %v207_v14  ;;  %v124_v17 = vunpack.c.h.bf16 %v1890_v8  ;;  %v249_v18 = vadd.f32 %v84_v35, %v76_v0  ;;  %v346_v29 = vadd.f32 %v345_v3, %v344_v12  ;;  %v2024_v35 = vld [vmem:[%s2084_s0 + $0x158] sm:$0xff] }
  0x46   :  { %v313_v41 = vadd.f32 %v312_v11, %v311_v1  ;;  %v156_v15 = vunpack.c.h.bf16 %v1901_v10  ;;  %v353_v19 = vadd.f32 %v140_v4, %v132_v2  ;;  %v243_v61 = vrot.slane %v242_v54, 4  ;;  %v1971_v10 = vld [vmem:[%s2084_s0 + $0x18] sm:$0xff] }
  0x47   :  { %v393_v20 = vpack.c.bf16 %v209_v16, %v209_v16  ;;  %v180_v28 = vunpack.c.h.bf16 %v1914_v30  ;;  %v250_v21 = vadd.f32 %v249_v18, %v92_v7  ;;  %v347_v43 = vrot.slane %v346_v29, 4  ;;  %v2031_v5 = vld [vmem:[%s2084_s0 + $0x1b8] sm:$0x11] }
  0x48   :  { %v401_v23 = vpack.c.bf16 %v313_v41, %v313_v41  ;;  %v164_v42 = vunpack.c.h.bf16 %v1934_v32  ;;  %v354_v27 = vadd.f32 %v353_v19, %v148_v57  ;;  %v244_v56 = vadd.f32 %v243_v61, %v242_v54  ;;  %v1977_v32 = vld [vmem:[%s2084_s0 + $0x38] sm:$0xff] }
  0x49   :  { %v557_v24 = vunpack.c.l.b16 %v393_v20  ;;  %v116_v8 = vunpack.c.h.bf16 %v1939_v34  ;;  %v251_v26 = vadd.f32 %v250_v21, %v100_v9  ;;  %v348_v60 = vadd.f32 %v347_v43, %v346_v29  ;;  %v2038_v12 = vld [vmem:[%s2084_s0 + $0x178] sm:$0xff] }
  0x4a   :  { %v565_v31 = vunpack.c.l.b16 %v401_v23  ;;  %v172_v30 = vunpack.c.h.bf16 %v1944_v36  ;;  %v355_v25 = vadd.f32 %v354_v27, %v156_v15  ;;  %v245_v33 = vrot.slane %v244_v56, 2  ;;  %v1989_v36 = vld [vmem:[%s2084_s0 + $0x118] sm:$0xff] }
  0x4b   :  { %v252_v37 = vadd.f32 %v251_v26, %v108_v13  ;;  %v254_v34 = vsel %vm188_vm0, %v124_v17, 0.0  ;;  %v358_v38 = vsel %vm188_vm0, %v180_v28, 0.0  ;;  %v349_v44 = vrot.slane %v348_v60, 2  ;;  %v2044_v17 = vld [vmem:[%s2084_s0 + $0xb8] sm:$0xff] }
  0x4c   :  { %v574_v40 = vsel %vm572_vm1, %v565_v31, %v557_v24  ;;  %v356_v45 = vadd.f32 %v355_v25, %v164_v42  ;;  %v77_v48 = vunpack.c.l.bf16 %v1971_v10  ;;  %v246_v50 = vadd.f32 %v245_v33, %v244_v56  ;;  %v2050_v19 = vld [vmem:[%s2084_s0 + $0x198] sm:$0xff] }
  0x4d   :  { %v582_v49 = vpack.c.b16 %v574_v40, %v574_v40  ;;  %v253_v51 = vadd.f32 %v252_v37, %v116_v8  ;;  %v85_v55 = vunpack.c.l.bf16 %v1977_v32  ;;  %v350_v59 = vadd.f32 %v349_v44, %v348_v60 }
  0x4e   :  { %v357_v62 = vadd.f32 %v356_v45, %v172_v30  ;;  %v133_v3 = vunpack.c.l.bf16 %v1984_v39  ;;  %v141_v14 = vunpack.c.l.bf16 %v1989_v36  ;;  %v247_v58 = vrot.slane %v246_v50, 1 }
  0x4f   :  { %1002 = vmatmul.bf16.vlgmr.msra.gmra.mxu1 %v582_v49  ;;  %v255_v0 = vadd.f32 %v254_v34, %v253_v51  ;;  %v93_v1 = vunpack.c.l.bf16 %v1995_v46  ;;  %v101_v22 = vunpack.c.l.bf16 %v2000_v47  ;;  %v351_v2 = vrot.slane %v350_v59, 1 }
  0x50   :  { %v359_v4 = vadd.f32 %v358_v38, %v357_v62  ;;  %v109_v6 = vunpack.c.l.bf16 %v2006_v52  ;;  %v149_v7 = vunpack.c.l.bf16 %v2011_v53  ;;  %v248_v9 = vadd.f32 %v247_v58, %v246_v50 }
  0x51   :  { %v256_v11 = vrot.slane %v255_v0, 4  ;;  %v125_v13 = vunpack.c.l.bf16 %v2017_v63  ;;  %v262_v57 = vadd.f32 %v85_v55, %v77_v48  ;;  %v352_v16 = vadd.f32 %v351_v2, %v350_v59 }
  0x52   :  { %v360_v54 = vrot.slane %v359_v4, 4  ;;  %v157_v18 = vunpack.c.l.bf16 %v2024_v35  ;;  %v366_v41 = vadd.f32 %v141_v14, %v133_v3  ;;  %v396_v29 = vpack.c.bf16 %v248_v9, %v248_v9 }
  0x53   :  { %v257_v15 = vadd.f32 %v256_v11, %v255_v0  ;;  %v181_v20 = vunpack.c.l.bf16 %v2031_v5  ;;  %v263_v61 = vadd.f32 %v262_v57, %v93_v1  ;;  %v404_v28 = vpack.c.bf16 %v352_v16, %v352_v16 }
  0x54   :  { %v361_v21 = vadd.f32 %v360_v54, %v359_v4  ;;  %v165_v23 = vunpack.c.l.bf16 %v2038_v12  ;;  %v367_v43 = vadd.f32 %v366_v41, %v149_v7  ;;  %v560_v42 = vunpack.c.l.b16 %v396_v29 }
  0x55   :  { %v258_v27 = vrot.slane %v257_v15, 2  ;;  %v117_v24 = vunpack.c.l.bf16 %v2044_v17  ;;  %v264_v56 = vadd.f32 %v263_v61, %v101_v22  ;;  %v568_v8 = vunpack.c.l.b16 %v404_v28 }
  0x56   :  { %v362_v26 = vrot.slane %v361_v21, 2  ;;  %v173_v31 = vunpack.c.l.bf16 %v2050_v19  ;;  %v368_v60 = vadd.f32 %v367_v43, %v157_v18  ;;  %v267_v33 = vsel %vm188_vm0, %v125_v13, 0.0 }
  0x57   :  { %v259_v30 = vadd.f32 %v258_v27, %v257_v15  ;;  %v265_v25 = vadd.f32 %v264_v56, %v109_v6  ;;  %v371_v37 = vsel %vm188_vm0, %v181_v20, 0.0  ;;  %v577_v34 = vsel %vm572_vm1, %v568_v8, %v560_v42 }
  0x58   :  { %v363_v38 = vadd.f32 %v362_v26, %v361_v21  ;;  %v369_v40 = vadd.f32 %v368_v60, %v165_v23  ;;  %v78_v44 = vunpack.c.h.bf16 %v1971_v10  ;;  %v585_v45 = vpack.c.b16 %v577_v34, %v577_v34 }
  0x59   :  { %v260_v48 = vrot.slane %v259_v30, 1  ;;  %v266_v49 = vadd.f32 %v265_v25, %v117_v24  ;;  %v86_v50 = vunpack.c.h.bf16 %v1977_v32  ;;  %v134_v59 = vunpack.c.h.bf16 %v1984_v39 }
  0x5a   :  { %v364_v51 = vrot.slane %v363_v38, 1  ;;  %v370_v55 = vadd.f32 %v369_v40, %v173_v31  ;;  %v142_v62 = vunpack.c.h.bf16 %v1989_v36  ;;  %1041 = vmatmul.bf16.vlgmr.msrb.gmra.mxu0 %v585_v45  ;;  %v94_v58 = vunpack.c.h.bf16 %v1995_v46 }
  0x5b   :  { %v261_v3 = vadd.f32 %v260_v48, %v259_v30  ;;  %v268_v14 = vadd.f32 %v267_v33, %v266_v49  ;;  %v102_v10 = vunpack.c.h.bf16 %v2000_v47  ;;  %v150_v22 = vunpack.c.h.bf16 %v2011_v53 }
  0x5c   :  { %v365_v0 = vadd.f32 %v364_v51, %v363_v38  ;;  %v372_v1 = vadd.f32 %v371_v37, %v370_v55  ;;  %v110_v32 = vunpack.c.h.bf16 %v2006_v52  ;;  %v275_v6 = vadd.f32 %v86_v50, %v78_v44 }
  0x5d   :  { %v397_v2 = vpack.c.bf16 %v261_v3, %v261_v3  ;;  %v269_v4 = vrot.slane %v268_v14, 4  ;;  %v158_v36 = vunpack.c.h.bf16 %v2024_v35  ;;  %v379_v9 = vadd.f32 %v142_v62, %v134_v59 }
  0x5e   :  { %v405_v7 = vpack.c.bf16 %v365_v0, %v365_v0  ;;  %v373_v39 = vrot.slane %v372_v1, 4  ;;  %v126_v46 = vunpack.c.h.bf16 %v2017_v63  ;;  %v276_v57 = vadd.f32 %v275_v6, %v94_v58 }
  0x5f   :  { %v561_v11 = vunpack.c.l.b16 %v397_v2  ;;  %v270_v13 = vadd.f32 %v269_v4, %v268_v14  ;;  %v166_v47 = vunpack.c.h.bf16 %v2038_v12  ;;  %v380_v53 = vadd.f32 %v379_v9, %v150_v22 }
  0x60   :  { %v569_v16 = vunpack.c.l.b16 %v405_v7  ;;  %v374_v54 = vadd.f32 %v373_v39, %v372_v1  ;;  %v118_v41 = vunpack.c.h.bf16 %v2044_v17  ;;  %v182_v52 = vunpack.c.h.bf16 %v2031_v5 }
  0x61   :  { %v271_v18 = vrot.slane %v270_v13, 2  ;;  %v277_v29 = vadd.f32 %v276_v57, %v102_v10  ;;  %v174_v20 = vunpack.c.h.bf16 %v2050_v19  ;;  %v381_v61 = vadd.f32 %v380_v53, %v158_v36 }
  0x62   :  { %v578_v15 = vsel %vm572_vm1, %v569_v16, %v561_v11  ;;  %v375_v35 = vrot.slane %v374_v54, 2  ;;  %v280_v43 = vsel %vm188_vm0, %v126_v46, 0.0  ;;  %v384_v17 = vsel %vm188_vm0, %v182_v52, 0.0  ;;  %v1423_v46 = vld [vmem:[%s2086_s2] ss:$0 sm:$0xff] }
  0x63   :  { %v586_v28 = vpack.c.b16 %v578_v15, %v578_v15  ;;  %v272_v63 = vadd.f32 %v271_v18, %v270_v13  ;;  %v278_v21 = vadd.f32 %v277_v29, %v110_v32  ;;  %v382_v12 = vadd.f32 %v381_v61, %v166_v47 }
  0x64   :  { %v376_v23 = vadd.f32 %v375_v35, %v374_v54 }
  0x65   :  { %1054 = vmatmul.bf16.vlgmr.msrb.gmra.mxu1 %v586_v28  ;;  %v273_v42 = vrot.slane %v272_v63, 1  ;;  %v279_v27 = vadd.f32 %v278_v21, %v118_v41  ;;  %v383_v24 = vadd.f32 %v382_v12, %v174_v20 }
  0x66   :  { %v377_v5 = vrot.slane %v376_v23, 1 }
  0x67   :  { %v274_v56 = vadd.f32 %v273_v42, %v272_v63  ;;  %v281_v8 = vadd.f32 %v280_v43, %v279_v27  ;;  %v385_v31 = vadd.f32 %v384_v17, %v383_v24 }
  0x68   :  { %v378_v26 = vadd.f32 %v377_v5, %v376_v23 }
  0x69   :  { %v398_v19 = vpack.c.bf16 %v274_v56, %v274_v56  ;;  %v282_v60 = vrot.slane %v281_v8, 4  ;;  %v386_v25 = vrot.slane %v385_v31, 4 }
  0x6a   :  { %v406_v30 = vpack.c.bf16 %v378_v26, %v378_v26 }
  0x6b   :  { %v562_v33 = vunpack.c.l.b16 %v398_v19  ;;  %v283_v37 = vadd.f32 %v282_v60, %v281_v8  ;;  %v387_v38 = vadd.f32 %v386_v25, %v385_v31 }
  0x6c   :  { %v570_v34 = vunpack.c.l.b16 %v406_v30 }
  0x6d   :  { %v284_v40 = vrot.slane %v283_v37, 2  ;;  %v388_v45 = vrot.slane %v387_v38, 2 }
  0x6e   :  { %v579_v44 = vsel %vm572_vm1, %v570_v34, %v562_v33 }
  0x6f   :  { %v587_v48 = vpack.c.b16 %v579_v44, %v579_v44  ;;  %v285_v49 = vadd.f32 %v284_v40, %v283_v37  ;;  %v389_v50 = vadd.f32 %v388_v45, %v387_v38 }
  0x71   :  { %1067 = vmatmul.bf16.vlgmr.msrb.gmra.mxu2 %v587_v48  ;;  %v286_v51 = vrot.slane %v285_v49, 1  ;;  %v390_v55 = vrot.slane %v389_v50, 1 }
  0x73   :  { %v287_v59 = vadd.f32 %v286_v51, %v285_v49  ;;  %v391_v62 = vadd.f32 %v390_v55, %v389_v50 }
  0x75   :  { %v399_v3 = vpack.c.bf16 %v287_v59, %v287_v59  ;;  %v407_v14 = vpack.c.bf16 %v391_v62, %v391_v62 }
  0x77   :  { %v563_v58 = vunpack.c.l.b16 %v399_v3  ;;  %v571_v0 = vunpack.c.l.b16 %v407_v14 }
  0x79   :  { %v580_v1 = vsel %vm572_vm1, %v571_v0, %v563_v58 }
  0x7a   :  { %v588_v10 = vpack.c.b16 %v580_v1, %v580_v1 }
  0x7c   :  { %1080 = vmatmul.bf16.vlgmr.msrb.gmra.mxu3 %v588_v10 }
  0xb6   :  { %v1016_v22 = vpop.f32.mrf.mxu2 }
  0xba   :  { %v1029_v2 = vpop.f32.mrf.mxu3 }
  0xbe   :  { %v1018_v32 = vpop.f32.mrf.mxu2 }
  0xbf   :  { %v990_v4 = vpop.f32.mrf.mxu0 }
  0xc0   :  { %v991_v57 = vadd.f32 %v1423_v46, %v990_v4 }
  0xc2   :  { %v1031_v6 = vpop.f32.mrf.mxu3 }
  0xc7   :  { %v992_v7 = vpop.f32.mrf.mxu0 }
  0xcc   :  { %v1003_v39 = vpop.f32.mrf.mxu1 }
  0xcd   :  { %v1004_v54 = vadd.f32 %v1003_v39, %v991_v57 }
  0xcf   :  { %v1017_v47 = vadd.f32 %v1016_v22, %v1004_v54 }
  0xd1   :  { %v1030_v18 = vadd.f32 %v1029_v2, %v1017_v47 }
  0xd4   :  { %v1005_v36 = vpop.f32.mrf.mxu1 }
  0xd7   :  { %v1042_v9 = vpop.f32.mrf.mxu0 }
  0xd8   :  { %v1043_v41 = vadd.f32 %v1042_v9, %v1030_v18 }
  0xdf   :  { %v1044_v11 = vpop.f32.mrf.mxu0 }
  0xe2   :  { %v1055_v13 = vpop.f32.mrf.mxu1 }
  0xe3   :  { %v1056_v52 = vadd.f32 %v1055_v13, %v1043_v41 }
  0xea   :  { %v1057_v16 = vpop.f32.mrf.mxu1 }
  0xf4   :  { %v1068_v53 = vpop.f32.mrf.mxu2 }
  0xf5   :  { %v1069_v15 = vadd.f32 %v1068_v53, %v1056_v52 }
  0xfc   :  { %v1070_v29 = vpop.f32.mrf.mxu2 }
  0xff   :  { %v1081_v35 = vpop.f32.mrf.mxu3 }
 0x100   :  { %v1082_v20 = vadd.f32 %v1081_v35, %v1069_v15 }
 0x102   :  { %1085 = vst [vmem:[#allocation2] sm:$0x3] %v1082_v20 }
 0x103   :  { %1096 = dma.vmem_to_hbm [thread:$0]  %s1092_s9, 32, %s1094_s12, [#allocation3]  }
 0x107   :  { %v1083_v61 = vpop.f32.mrf.mxu3 }
 0x108   :  { %1448 = dma.done.wait [#allocation3], 32  }
 0x109   :  { %1449 = vsyncadd [#allocation3], 4294967264 }
 0x10a   :  { %1101 = vsyncpa [#allocation3], 1 }

</bundles_post_ra>
